<compile_context>
chip_gen: v5e
topology: v5e:2x2
jax: 0.10.0
libtpu: 0.0.40
codegen_flags: <defaults>
</compile_context>

<pallas_src>
import functools

import jax
import jax.numpy as jnp
from jax import lax
from jax.experimental import pallas as pl
from jax.experimental.pallas import tpu as pltpu


_CS = 512          # batch columns (lanes) processed per inner-loop chunk


def _round_up(n, m):
    return ((n + m - 1) // m) * m


def _choose_tile(batch, block_b):
    """Batch-tile size (multiple of _CS) and grid length.

    Tile derived from the batch so padding stays < one chunk per step; a batch that
    would fit one big tile is still split into 2 steps (when there is enough work)
    so "parallel" grid sharding engages both v7x TensorCores.
    """
    nsteps = -(-batch // block_b)                       # ceil
    if nsteps == 1 and batch >= 4 * _CS:
        nsteps = 2
    bt = _round_up(-(-batch // nsteps), _CS)
    grid = -(-batch // bt)
    return bt, grid


def _featseed(feat_u32, seed_u32):
    """Per-(feature, seed) term of the dropout hash (hoisted out of the column loop)."""
    return (feat_u32 * jnp.uint32(0x85EBCA77)) ^ (seed_u32 * jnp.uint32(0xC2B2AE3D))


def _hash_keep(col_u32, featseed_u32):
    """Bernoulli(0.5) keep mask: top bit of a multiply/xorshift/multiply counter hash."""
    h = (col_u32 * jnp.uint32(0x9E3779B1)) ^ featseed_u32
    h = h ^ (h >> 16)
    h = h * jnp.uint32(0x7FEB352D)
    return h < jnp.uint32(0x80000000)                   # top bit clear -> keep (p=0.5)


def _dense(w, x, b_bcast):
    """(O, K) @ (K, C) + b as an unrolled broadcast-FMA on the VPU.

    K is 4/16/8 -- far below the MXU systolic size -- so lane-wide FMAs are cheaper
    than a padded MXU matmul.  The (O,1)/(1,C) operands rely on Mosaic's replicated
    layouts; the bias arrives pre-broadcast (hoisted once per grid step).
    """
    acc = b_bcast
    for k in range(w.shape[1]):
        acc = acc + w[:, k:k + 1] * x[k:k + 1, :]
    return acc


def mlp_dropout_kernel(seed_ref, x_ref, w1_ref, b1_ref, w2_ref, b2_ref,
                       w3_ref, b3_ref, o_ref):
    n_chunks = x_ref.shape[0]            # chunks of _CS batch columns in this tile
    nf2 = w2_ref.shape[0]                # 8 = fc2 output features (dropout rows)

    # ---- hoisted once per grid step (loop-invariant) ---------------------------
    w1 = w1_ref[...]
    w2 = w2_ref[...]
    w3 = w3_ref[...]
    b1 = jnp.broadcast_to(b1_ref[...], (w1.shape[0], _CS))
    b2 = jnp.broadcast_to(b2_ref[...], (w2.shape[0], _CS))
    b3 = jnp.broadcast_to(b3_ref[...], (w3.shape[0], _CS))

    seed_u = seed_ref[0].astype(jnp.uint32)
    feat = lax.broadcasted_iota(jnp.int32, (nf2, _CS), 0).astype(jnp.uint32)
    featseed = _featseed(feat, seed_u)                                   # (8, _CS)
    lane = lax.broadcasted_iota(jnp.int32, (nf2, _CS), 1).astype(jnp.uint32)
    chunk0 = (pl.program_id(0) * n_chunks).astype(jnp.uint32)

    def chunk_body(c, carry):
        x = x_ref[c]                                                     # (4, _CS)
        h1 = jnp.maximum(_dense(w1, x, b1), 0.0)                         # (16, _CS)
        h2 = jnp.maximum(_dense(w2, h1, b2), 0.0)                        # (8, _CS)
        # Dropout(p=0.5): keyed on the *global* batch column -> tiling invariant.
        col = lane + (chunk0 + c.astype(jnp.uint32)) * jnp.uint32(_CS)
        h2 = jnp.where(_hash_keep(col, featseed), h2, 0.0)
        # fc3 (the 1/(1-p)=2 survivor scale is folded into w3 by the wrapper).
        o_ref[c] = _dense(w3, h2, b3).astype(o_ref.dtype)
        return carry

    lax.fori_loop(0, n_chunks, chunk_body, 0)


@functools.partial(jax.jit, static_argnames=("block_b",))
def mlp_with_dropout(x, params, seed, *, block_b=65536):
    """Training-mode forward of MLPWithDropout.

    x: (B, 4) float.  params: torch-layout dict (w*: (out, in), b*: (out,)).
    seed: int scalar keying the dropout mask.
    """
    B = x.shape[0]
    bt, grid = _choose_tile(B, block_b)
    chunks_per_step = bt // _CS
    b_pad = grid * bt
    n_chunks_total = b_pad // _CS

    # Chunked feature-major layout: x3[g, f, l] = x[g*_CS + l, f] (batch on lanes).
    # TODO(synk): feature-major activations in the surrounding model would remove
    # this transpose and the one on the way out (extra HBM passes outside the kernel).
    x_pad = jnp.pad(x.astype(jnp.float32), ((0, b_pad - B), (0, 0)))
    x3 = x_pad.reshape(n_chunks_total, _CS, 4).transpose(0, 2, 1)

    w1, w2 = params["w1"], params["w2"]
    w3 = params["w3"] * 2.0                      # fold dropout 1/(1-p) survivor scale
    b1 = params["b1"].reshape(-1, 1)
    b2 = params["b2"].reshape(-1, 1)
    b3 = params["b3"].reshape(-1, 1)
    seed_arr = jnp.full((1,), seed, dtype=jnp.int32)

    def _full(shape):                            # whole tiny weight/bias, every step
        return pl.BlockSpec(shape, lambda i, seed_ref: (0, 0))

    grid_spec = pltpu.PrefetchScalarGridSpec(
        num_scalar_prefetch=1,
        grid=(grid,),
        in_specs=[
            pl.BlockSpec((chunks_per_step, 4, _CS), lambda i, seed_ref: (i, 0, 0)),
            _full((16, 4)), _full((16, 1)),       # fc1
            _full((8, 16)), _full((8, 1)),        # fc2
            _full((2, 8)), _full((2, 1)),         # fc3 (pre-scaled)
        ],
        out_specs=pl.BlockSpec((chunks_per_step, 2, _CS),
                               lambda i, seed_ref: (i, 0, 0)),
    )

    o3 = pl.pallas_call(
        mlp_dropout_kernel,
        out_shape=jax.ShapeDtypeStruct((n_chunks_total, 2, _CS), jnp.float32),
        grid_spec=grid_spec,
        compiler_params=pltpu.CompilerParams(
            dimension_semantics=("parallel",),
            vmem_limit_bytes=32 * 1024 * 1024),
    )(seed_arr, x3, w1, b1, w2, b2, w3, b3)

    return o3.transpose(0, 2, 1).reshape(b_pad, 2)[:B]   # back to (B, 2) batch-major


def _dropout_keep_mask(n_rows, n_feat, seed):
    col = jnp.arange(n_rows, dtype=jnp.uint32)[:, None]
    feat = jnp.arange(n_feat, dtype=jnp.uint32)[None, :]
    return _hash_keep(col, _featseed(feat, jnp.uint32(seed)))


def mlp_reference(x, params, seed):
    """Pure-JAX reference using the identical hash-based dropout mask."""
    hp = lax.Precision.HIGHEST
    h1 = jnp.maximum(jnp.dot(x, params["w1"].T, precision=hp) + params["b1"], 0.0)
    h2 = jnp.maximum(jnp.dot(h1, params["w2"].T, precision=hp) + params["b2"], 0.0)
    keep = _dropout_keep_mask(x.shape[0], h2.shape[1], seed)
    h2 = jnp.where(keep, h2 * 2.0, 0.0)
    return jnp.dot(h2, params["w3"].T, precision=hp) + params["b3"]


def init_params(key):
    """Torch nn.Linear-style shapes (weight: (out, in), bias: (out,)),
    uniform(-1/sqrt(fan_in), 1/sqrt(fan_in))."""
    def linear(k, fan_in, fan_out):
        kw, kb = jax.random.split(k)
        bound = 1.0 / jnp.sqrt(fan_in)
        w = jax.random.uniform(kw, (fan_out, fan_in), jnp.float32, -bound, bound)
        b = jax.random.uniform(kb, (fan_out,), jnp.float32, -bound, bound)
        return w, b

    k1, k2, k3 = jax.random.split(key, 3)
    w1, b1 = linear(k1, 4, 16)
    w2, b2 = linear(k2, 16, 8)
    w3, b3 = linear(k3, 8, 2)
    return dict(w1=w1, b1=b1, w2=w2, b2=b2, w3=w3, b3=b3)


if __name__ == "__main__":
    key = jax.random.PRNGKey(0)
    kp, kx1, kx2 = jax.random.split(key, 3)
    params = init_params(kp)

    # Small single-tile case.
    x1 = jax.random.normal(kx1, (8, 4), dtype=jnp.float32)
    out1 = jax.block_until_ready(mlp_with_dropout(x1, params, 1234))
    assert out1.shape == (8, 2) and out1.dtype == jnp.float32
    ref1 = mlp_reference(x1, params, 1234)
    assert jnp.allclose(out1, ref1, atol=1e-4, rtol=1e-4), \
        float(jnp.max(jnp.abs(out1 - ref1)))

    # Multi-tile case: B not a multiple of 128, several grid steps -> exercises the
    # global-column dropout offset, the batch padding, and the final slice.
    x2 = jax.random.normal(kx2, (9000, 4), dtype=jnp.float32)
    out2 = jax.block_until_ready(mlp_with_dropout(x2, params, 7, block_b=4096))
    assert out2.shape == (9000, 2)
    ref2 = mlp_reference(x2, params, 7)
    assert jnp.allclose(out2, ref2, atol=1e-4, rtol=1e-4), \
        float(jnp.max(jnp.abs(out2 - ref2)))

    # Dropout sanity: keep rate ~ 0.5.
    rate = float(jnp.mean(_dropout_keep_mask(9000, 8, 7).astype(jnp.float32)))
    assert 0.40 < rate < 0.60, rate

    print("KERNEL_OK")
</pallas_src>

<mosaic_0001>
module attributes {stable_mosaic.version = 11 : i64} {
  func.func @mlp_dropout_kernel(%arg0: i32, %arg1: memref<1xi32, #tpu.memory_space<smem>>, %arg2: memref<1x4x512xf32, #tpu.memory_space<vmem>>, %arg3: memref<16x4xf32, #tpu.memory_space<vmem>>, %arg4: memref<16x1xf32, #tpu.memory_space<vmem>>, %arg5: memref<8x16xf32, #tpu.memory_space<vmem>>, %arg6: memref<8x1xf32, #tpu.memory_space<vmem>>, %arg7: memref<2x8xf32, #tpu.memory_space<vmem>>, %arg8: memref<2x1xf32, #tpu.memory_space<vmem>>, %arg9: memref<1x2x512xf32, #tpu.memory_space<vmem>>) attributes {dimension_semantics = [#tpu.dimension_semantics<parallel>], iteration_bounds = array<i64: 1>, scalar_prefetch = 1 : i64, scratch_operands = 0 : i64, tpu.core_type = #tpu.core_type<tc>, window_params = [{transform_indices = @transform_0, window_bounds = array<i64: 1, 4, 512>}, {pipeline_mode = #tpu.pipeline_mode<synchronous>, transform_indices = @transform_1, window_bounds = array<i64: 16, 4>}, {pipeline_mode = #tpu.pipeline_mode<synchronous>, transform_indices = @transform_2, window_bounds = array<i64: 16, 1>}, {pipeline_mode = #tpu.pipeline_mode<synchronous>, transform_indices = @transform_3, window_bounds = array<i64: 8, 16>}, {pipeline_mode = #tpu.pipeline_mode<synchronous>, transform_indices = @transform_4, window_bounds = array<i64: 8, 1>}, {pipeline_mode = #tpu.pipeline_mode<synchronous>, transform_indices = @transform_5, window_bounds = array<i64: 2, 8>}, {pipeline_mode = #tpu.pipeline_mode<synchronous>, transform_indices = @transform_6, window_bounds = array<i64: 2, 1>}, {transform_indices = @transform_7, window_bounds = array<i64: 1, 2, 512>}]} {
    %c0 = arith.constant 0 : index
    %c0_0 = arith.constant 0 : index
    %0 = vector.load %arg3[%c0, %c0_0] : memref<16x4xf32, #tpu.memory_space<vmem>>, vector<16x4xf32>
    %c0_1 = arith.constant 0 : index
    %c0_2 = arith.constant 0 : index
    %1 = vector.load %arg5[%c0_1, %c0_2] : memref<8x16xf32, #tpu.memory_space<vmem>>, vector<8x16xf32>
    %c0_3 = arith.constant 0 : index
    %c0_4 = arith.constant 0 : index
    %2 = vector.load %arg7[%c0_3, %c0_4] : memref<2x8xf32, #tpu.memory_space<vmem>>, vector<2x8xf32>
    %c0_5 = arith.constant 0 : index
    %c0_6 = arith.constant 0 : index
    %3 = vector.load %arg4[%c0_5, %c0_6] : memref<16x1xf32, #tpu.memory_space<vmem>>, vector<16x1xf32>
    %4 = vector.shape_cast %3 : vector<16x1xf32> to vector<16x1xf32>
    %5 = vector.broadcast %4 : vector<16x1xf32> to vector<16x512xf32>
    %c0_7 = arith.constant 0 : index
    %c0_8 = arith.constant 0 : index
    %6 = vector.load %arg6[%c0_7, %c0_8] : memref<8x1xf32, #tpu.memory_space<vmem>>, vector<8x1xf32>
    %7 = vector.shape_cast %6 : vector<8x1xf32> to vector<8x1xf32>
    %8 = vector.broadcast %7 : vector<8x1xf32> to vector<8x512xf32>
    %c0_9 = arith.constant 0 : index
    %c0_10 = arith.constant 0 : index
    %9 = vector.load %arg8[%c0_9, %c0_10] : memref<2x1xf32, #tpu.memory_space<vmem>>, vector<2x1xf32>
    %10 = vector.shape_cast %9 : vector<2x1xf32> to vector<2x1xf32>
    %11 = vector.broadcast %10 : vector<2x1xf32> to vector<2x512xf32>
    %c0_11 = arith.constant 0 : index
    %12 = memref.load %arg1[%c0_11] : memref<1xi32, #tpu.memory_space<smem>>
    %13 = tpu.iota {dimensions = array<i32: 0>} : vector<8x512xi32>
    %c-2048144777_i32 = arith.constant -2048144777 : i32
    %14 = vector.broadcast %c-2048144777_i32 : i32 to vector<8x512xi32>
    %15 = arith.muli %13, %14 : vector<8x512xi32>
    %c-1028477379_i32 = arith.constant -1028477379 : i32
    %16 = arith.muli %12, %c-1028477379_i32 : i32
    %17 = vector.broadcast %16 : i32 to vector<8x512xi32>
    %18 = arith.xori %15, %17 : vector<8x512xi32>
    %19 = tpu.iota {dimensions = array<i32: 1>} : vector<8x512xi32>
    %c1_i32 = arith.constant 1 : i32
    %20 = arith.muli %arg0, %c1_i32 : i32
    %c0_i32 = arith.constant 0 : i32
    %21 = arith.index_cast %c0_i32 : i32 to index
    %c0_12 = arith.constant 0 : index
    %c0_13 = arith.constant 0 : index
    %22 = vector.load %arg2[%21, %c0_12, %c0_13] : memref<1x4x512xf32, #tpu.memory_space<vmem>>, vector<1x4x512xf32>
    %23 = vector.shape_cast %22 : vector<1x4x512xf32> to vector<4x512xf32>
    %24 = vector.extract_strided_slice %0 {offsets = [0, 0], sizes = [16, 1], strides = [1, 1]} : vector<16x4xf32> to vector<16x1xf32>
    %25 = vector.extract_strided_slice %23 {offsets = [0, 0], sizes = [1, 512], strides = [1, 1]} : vector<4x512xf32> to vector<1x512xf32>
    %26 = vector.broadcast %24 : vector<16x1xf32> to vector<16x512xf32>
    %27 = vector.broadcast %25 : vector<1x512xf32> to vector<16x512xf32>
    %28 = arith.mulf %26, %27 : vector<16x512xf32>
    %29 = arith.addf %5, %28 : vector<16x512xf32>
    %30 = vector.extract_strided_slice %0 {offsets = [0, 1], sizes = [16, 1], strides = [1, 1]} : vector<16x4xf32> to vector<16x1xf32>
    %31 = vector.extract_strided_slice %23 {offsets = [1, 0], sizes = [1, 512], strides = [1, 1]} : vector<4x512xf32> to vector<1x512xf32>
    %32 = vector.broadcast %30 : vector<16x1xf32> to vector<16x512xf32>
    %33 = vector.broadcast %31 : vector<1x512xf32> to vector<16x512xf32>
    %34 = arith.mulf %32, %33 : vector<16x512xf32>
    %35 = arith.addf %29, %34 : vector<16x512xf32>
    %36 = vector.extract_strided_slice %0 {offsets = [0, 2], sizes = [16, 1], strides = [1, 1]} : vector<16x4xf32> to vector<16x1xf32>
    %37 = vector.extract_strided_slice %23 {offsets = [2, 0], sizes = [1, 512], strides = [1, 1]} : vector<4x512xf32> to vector<1x512xf32>
    %38 = vector.broadcast %36 : vector<16x1xf32> to vector<16x512xf32>
    %39 = vector.broadcast %37 : vector<1x512xf32> to vector<16x512xf32>
    %40 = arith.mulf %38, %39 : vector<16x512xf32>
    %41 = arith.addf %35, %40 : vector<16x512xf32>
    %42 = vector.extract_strided_slice %0 {offsets = [0, 3], sizes = [16, 1], strides = [1, 1]} : vector<16x4xf32> to vector<16x1xf32>
    %43 = vector.extract_strided_slice %23 {offsets = [3, 0], sizes = [1, 512], strides = [1, 1]} : vector<4x512xf32> to vector<1x512xf32>
    %44 = vector.broadcast %42 : vector<16x1xf32> to vector<16x512xf32>
    %45 = vector.broadcast %43 : vector<1x512xf32> to vector<16x512xf32>
    %46 = arith.mulf %44, %45 : vector<16x512xf32>
    %47 = arith.addf %41, %46 : vector<16x512xf32>
    %cst = arith.constant 0.000000e+00 : f32
    %48 = vector.broadcast %cst : f32 to vector<16x512xf32>
    %49 = arith.maximumf %47, %48 : vector<16x512xf32>
    %50 = vector.extract_strided_slice %1 {offsets = [0, 0], sizes = [8, 1], strides = [1, 1]} : vector<8x16xf32> to vector<8x1xf32>
    %51 = vector.extract_strided_slice %49 {offsets = [0, 0], sizes = [1, 512], strides = [1, 1]} : vector<16x512xf32> to vector<1x512xf32>
    %52 = vector.broadcast %50 : vector<8x1xf32> to vector<8x512xf32>
    %53 = vector.broadcast %51 : vector<1x512xf32> to vector<8x512xf32>
    %54 = arith.mulf %52, %53 : vector<8x512xf32>
    %55 = arith.addf %8, %54 : vector<8x512xf32>
    %56 = vector.extract_strided_slice %1 {offsets = [0, 1], sizes = [8, 1], strides = [1, 1]} : vector<8x16xf32> to vector<8x1xf32>
    %57 = vector.extract_strided_slice %49 {offsets = [1, 0], sizes = [1, 512], strides = [1, 1]} : vector<16x512xf32> to vector<1x512xf32>
    %58 = vector.broadcast %56 : vector<8x1xf32> to vector<8x512xf32>
    %59 = vector.broadcast %57 : vector<1x512xf32> to vector<8x512xf32>
    %60 = arith.mulf %58, %59 : vector<8x512xf32>
    %61 = arith.addf %55, %60 : vector<8x512xf32>
    %62 = vector.extract_strided_slice %1 {offsets = [0, 2], sizes = [8, 1], strides = [1, 1]} : vector<8x16xf32> to vector<8x1xf32>
    %63 = vector.extract_strided_slice %49 {offsets = [2, 0], sizes = [1, 512], strides = [1, 1]} : vector<16x512xf32> to vector<1x512xf32>
    %64 = vector.broadcast %62 : vector<8x1xf32> to vector<8x512xf32>
    %65 = vector.broadcast %63 : vector<1x512xf32> to vector<8x512xf32>
    %66 = arith.mulf %64, %65 : vector<8x512xf32>
    %67 = arith.addf %61, %66 : vector<8x512xf32>
    %68 = vector.extract_strided_slice %1 {offsets = [0, 3], sizes = [8, 1], strides = [1, 1]} : vector<8x16xf32> to vector<8x1xf32>
    %69 = vector.extract_strided_slice %49 {offsets = [3, 0], sizes = [1, 512], strides = [1, 1]} : vector<16x512xf32> to vector<1x512xf32>
    %70 = vector.broadcast %68 : vector<8x1xf32> to vector<8x512xf32>
    %71 = vector.broadcast %69 : vector<1x512xf32> to vector<8x512xf32>
    %72 = arith.mulf %70, %71 : vector<8x512xf32>
    %73 = arith.addf %67, %72 : vector<8x512xf32>
    %74 = vector.extract_strided_slice %1 {offsets = [0, 4], sizes = [8, 1], strides = [1, 1]} : vector<8x16xf32> to vector<8x1xf32>
    %75 = vector.extract_strided_slice %49 {offsets = [4, 0], sizes = [1, 512], strides = [1, 1]} : vector<16x512xf32> to vector<1x512xf32>
    %76 = vector.broadcast %74 : vector<8x1xf32> to vector<8x512xf32>
    %77 = vector.broadcast %75 : vector<1x512xf32> to vector<8x512xf32>
    %78 = arith.mulf %76, %77 : vector<8x512xf32>
    %79 = arith.addf %73, %78 : vector<8x512xf32>
    %80 = vector.extract_strided_slice %1 {offsets = [0, 5], sizes = [8, 1], strides = [1, 1]} : vector<8x16xf32> to vector<8x1xf32>
    %81 = vector.extract_strided_slice %49 {offsets = [5, 0], sizes = [1, 512], strides = [1, 1]} : vector<16x512xf32> to vector<1x512xf32>
    %82 = vector.broadcast %80 : vector<8x1xf32> to vector<8x512xf32>
    %83 = vector.broadcast %81 : vector<1x512xf32> to vector<8x512xf32>
    %84 = arith.mulf %82, %83 : vector<8x512xf32>
    %85 = arith.addf %79, %84 : vector<8x512xf32>
    %86 = vector.extract_strided_slice %1 {offsets = [0, 6], sizes = [8, 1], strides = [1, 1]} : vector<8x16xf32> to vector<8x1xf32>
    %87 = vector.extract_strided_slice %49 {offsets = [6, 0], sizes = [1, 512], strides = [1, 1]} : vector<16x512xf32> to vector<1x512xf32>
    %88 = vector.broadcast %86 : vector<8x1xf32> to vector<8x512xf32>
    %89 = vector.broadcast %87 : vector<1x512xf32> to vector<8x512xf32>
    %90 = arith.mulf %88, %89 : vector<8x512xf32>
    %91 = arith.addf %85, %90 : vector<8x512xf32>
    %92 = vector.extract_strided_slice %1 {offsets = [0, 7], sizes = [8, 1], strides = [1, 1]} : vector<8x16xf32> to vector<8x1xf32>
    %93 = vector.extract_strided_slice %49 {offsets = [7, 0], sizes = [1, 512], strides = [1, 1]} : vector<16x512xf32> to vector<1x512xf32>
    %94 = vector.broadcast %92 : vector<8x1xf32> to vector<8x512xf32>
    %95 = vector.broadcast %93 : vector<1x512xf32> to vector<8x512xf32>
    %96 = arith.mulf %94, %95 : vector<8x512xf32>
    %97 = arith.addf %91, %96 : vector<8x512xf32>
    %98 = vector.extract_strided_slice %1 {offsets = [0, 8], sizes = [8, 1], strides = [1, 1]} : vector<8x16xf32> to vector<8x1xf32>
    %99 = vector.extract_strided_slice %49 {offsets = [8, 0], sizes = [1, 512], strides = [1, 1]} : vector<16x512xf32> to vector<1x512xf32>
    %100 = vector.broadcast %98 : vector<8x1xf32> to vector<8x512xf32>
    %101 = vector.broadcast %99 : vector<1x512xf32> to vector<8x512xf32>
    %102 = arith.mulf %100, %101 : vector<8x512xf32>
    %103 = arith.addf %97, %102 : vector<8x512xf32>
    %104 = vector.extract_strided_slice %1 {offsets = [0, 9], sizes = [8, 1], strides = [1, 1]} : vector<8x16xf32> to vector<8x1xf32>
    %105 = vector.extract_strided_slice %49 {offsets = [9, 0], sizes = [1, 512], strides = [1, 1]} : vector<16x512xf32> to vector<1x512xf32>
    %106 = vector.broadcast %104 : vector<8x1xf32> to vector<8x512xf32>
    %107 = vector.broadcast %105 : vector<1x512xf32> to vector<8x512xf32>
    %108 = arith.mulf %106, %107 : vector<8x512xf32>
    %109 = arith.addf %103, %108 : vector<8x512xf32>
    %110 = vector.extract_strided_slice %1 {offsets = [0, 10], sizes = [8, 1], strides = [1, 1]} : vector<8x16xf32> to vector<8x1xf32>
    %111 = vector.extract_strided_slice %49 {offsets = [10, 0], sizes = [1, 512], strides = [1, 1]} : vector<16x512xf32> to vector<1x512xf32>
    %112 = vector.broadcast %110 : vector<8x1xf32> to vector<8x512xf32>
    %113 = vector.broadcast %111 : vector<1x512xf32> to vector<8x512xf32>
    %114 = arith.mulf %112, %113 : vector<8x512xf32>
    %115 = arith.addf %109, %114 : vector<8x512xf32>
    %116 = vector.extract_strided_slice %1 {offsets = [0, 11], sizes = [8, 1], strides = [1, 1]} : vector<8x16xf32> to vector<8x1xf32>
    %117 = vector.extract_strided_slice %49 {offsets = [11, 0], sizes = [1, 512], strides = [1, 1]} : vector<16x512xf32> to vector<1x512xf32>
    %118 = vector.broadcast %116 : vector<8x1xf32> to vector<8x512xf32>
    %119 = vector.broadcast %117 : vector<1x512xf32> to vector<8x512xf32>
    %120 = arith.mulf %118, %119 : vector<8x512xf32>
    %121 = arith.addf %115, %120 : vector<8x512xf32>
    %122 = vector.extract_strided_slice %1 {offsets = [0, 12], sizes = [8, 1], strides = [1, 1]} : vector<8x16xf32> to vector<8x1xf32>
    %123 = vector.extract_strided_slice %49 {offsets = [12, 0], sizes = [1, 512], strides = [1, 1]} : vector<16x512xf32> to vector<1x512xf32>
    %124 = vector.broadcast %122 : vector<8x1xf32> to vector<8x512xf32>
    %125 = vector.broadcast %123 : vector<1x512xf32> to vector<8x512xf32>
    %126 = arith.mulf %124, %125 : vector<8x512xf32>
    %127 = arith.addf %121, %126 : vector<8x512xf32>
    %128 = vector.extract_strided_slice %1 {offsets = [0, 13], sizes = [8, 1], strides = [1, 1]} : vector<8x16xf32> to vector<8x1xf32>
    %129 = vector.extract_strided_slice %49 {offsets = [13, 0], sizes = [1, 512], strides = [1, 1]} : vector<16x512xf32> to vector<1x512xf32>
    %130 = vector.broadcast %128 : vector<8x1xf32> to vector<8x512xf32>
    %131 = vector.broadcast %129 : vector<1x512xf32> to vector<8x512xf32>
    %132 = arith.mulf %130, %131 : vector<8x512xf32>
    %133 = arith.addf %127, %132 : vector<8x512xf32>
    %134 = vector.extract_strided_slice %1 {offsets = [0, 14], sizes = [8, 1], strides = [1, 1]} : vector<8x16xf32> to vector<8x1xf32>
    %135 = vector.extract_strided_slice %49 {offsets = [14, 0], sizes = [1, 512], strides = [1, 1]} : vector<16x512xf32> to vector<1x512xf32>
    %136 = vector.broadcast %134 : vector<8x1xf32> to vector<8x512xf32>
    %137 = vector.broadcast %135 : vector<1x512xf32> to vector<8x512xf32>
    %138 = arith.mulf %136, %137 : vector<8x512xf32>
    %139 = arith.addf %133, %138 : vector<8x512xf32>
    %140 = vector.extract_strided_slice %1 {offsets = [0, 15], sizes = [8, 1], strides = [1, 1]} : vector<8x16xf32> to vector<8x1xf32>
    %141 = vector.extract_strided_slice %49 {offsets = [15, 0], sizes = [1, 512], strides = [1, 1]} : vector<16x512xf32> to vector<1x512xf32>
    %142 = vector.broadcast %140 : vector<8x1xf32> to vector<8x512xf32>
    %143 = vector.broadcast %141 : vector<1x512xf32> to vector<8x512xf32>
    %144 = arith.mulf %142, %143 : vector<8x512xf32>
    %145 = arith.addf %139, %144 : vector<8x512xf32>
    %cst_14 = arith.constant 0.000000e+00 : f32
    %146 = vector.broadcast %cst_14 : f32 to vector<8x512xf32>
    %147 = arith.maximumf %145, %146 : vector<8x512xf32>
    %148 = arith.addi %20, %c0_i32 : i32
    %c512_i32 = arith.constant 512 : i32
    %149 = arith.muli %148, %c512_i32 : i32
    %150 = vector.broadcast %149 : i32 to vector<8x512xi32>
    %151 = arith.addi %19, %150 : vector<8x512xi32>
    %c-1640531535_i32 = arith.constant -1640531535 : i32
    %152 = vector.broadcast %c-1640531535_i32 : i32 to vector<8x512xi32>
    %153 = arith.muli %151, %152 : vector<8x512xi32>
    %154 = arith.xori %153, %18 : vector<8x512xi32>
    %c16_i32 = arith.constant 16 : i32
    %155 = vector.broadcast %c16_i32 : i32 to vector<8x512xi32>
    %156 = arith.shrui %154, %155 : vector<8x512xi32>
    %157 = arith.xori %154, %156 : vector<8x512xi32>
    %c2146121005_i32 = arith.constant 2146121005 : i32
    %158 = vector.broadcast %c2146121005_i32 : i32 to vector<8x512xi32>
    %159 = arith.muli %157, %158 : vector<8x512xi32>
    %c-2147483648_i32 = arith.constant -2147483648 : i32
    %160 = vector.broadcast %c-2147483648_i32 : i32 to vector<8x512xi32>
    %161 = arith.cmpi ult, %159, %160 : vector<8x512xi32>
    %cst_15 = arith.constant 0.000000e+00 : f32
    %162 = vector.broadcast %cst_15 : f32 to vector<8x512xf32>
    %163 = arith.select %161, %147, %162 : vector<8x512xi1>, vector<8x512xf32>
    %164 = vector.extract_strided_slice %2 {offsets = [0, 0], sizes = [2, 1], strides = [1, 1]} : vector<2x8xf32> to vector<2x1xf32>
    %165 = vector.extract_strided_slice %163 {offsets = [0, 0], sizes = [1, 512], strides = [1, 1]} : vector<8x512xf32> to vector<1x512xf32>
    %166 = vector.broadcast %164 : vector<2x1xf32> to vector<2x512xf32>
    %167 = vector.broadcast %165 : vector<1x512xf32> to vector<2x512xf32>
    %168 = arith.mulf %166, %167 : vector<2x512xf32>
    %169 = arith.addf %11, %168 : vector<2x512xf32>
    %170 = vector.extract_strided_slice %2 {offsets = [0, 1], sizes = [2, 1], strides = [1, 1]} : vector<2x8xf32> to vector<2x1xf32>
    %171 = vector.extract_strided_slice %163 {offsets = [1, 0], sizes = [1, 512], strides = [1, 1]} : vector<8x512xf32> to vector<1x512xf32>
    %172 = vector.broadcast %170 : vector<2x1xf32> to vector<2x512xf32>
    %173 = vector.broadcast %171 : vector<1x512xf32> to vector<2x512xf32>
    %174 = arith.mulf %172, %173 : vector<2x512xf32>
    %175 = arith.addf %169, %174 : vector<2x512xf32>
    %176 = vector.extract_strided_slice %2 {offsets = [0, 2], sizes = [2, 1], strides = [1, 1]} : vector<2x8xf32> to vector<2x1xf32>
    %177 = vector.extract_strided_slice %163 {offsets = [2, 0], sizes = [1, 512], strides = [1, 1]} : vector<8x512xf32> to vector<1x512xf32>
    %178 = vector.broadcast %176 : vector<2x1xf32> to vector<2x512xf32>
    %179 = vector.broadcast %177 : vector<1x512xf32> to vector<2x512xf32>
    %180 = arith.mulf %178, %179 : vector<2x512xf32>
    %181 = arith.addf %175, %180 : vector<2x512xf32>
    %182 = vector.extract_strided_slice %2 {offsets = [0, 3], sizes = [2, 1], strides = [1, 1]} : vector<2x8xf32> to vector<2x1xf32>
    %183 = vector.extract_strided_slice %163 {offsets = [3, 0], sizes = [1, 512], strides = [1, 1]} : vector<8x512xf32> to vector<1x512xf32>
    %184 = vector.broadcast %182 : vector<2x1xf32> to vector<2x512xf32>
    %185 = vector.broadcast %183 : vector<1x512xf32> to vector<2x512xf32>
    %186 = arith.mulf %184, %185 : vector<2x512xf32>
    %187 = arith.addf %181, %186 : vector<2x512xf32>
    %188 = vector.extract_strided_slice %2 {offsets = [0, 4], sizes = [2, 1], strides = [1, 1]} : vector<2x8xf32> to vector<2x1xf32>
    %189 = vector.extract_strided_slice %163 {offsets = [4, 0], sizes = [1, 512], strides = [1, 1]} : vector<8x512xf32> to vector<1x512xf32>
    %190 = vector.broadcast %188 : vector<2x1xf32> to vector<2x512xf32>
    %191 = vector.broadcast %189 : vector<1x512xf32> to vector<2x512xf32>
    %192 = arith.mulf %190, %191 : vector<2x512xf32>
    %193 = arith.addf %187, %192 : vector<2x512xf32>
    %194 = vector.extract_strided_slice %2 {offsets = [0, 5], sizes = [2, 1], strides = [1, 1]} : vector<2x8xf32> to vector<2x1xf32>
    %195 = vector.extract_strided_slice %163 {offsets = [5, 0], sizes = [1, 512], strides = [1, 1]} : vector<8x512xf32> to vector<1x512xf32>
    %196 = vector.broadcast %194 : vector<2x1xf32> to vector<2x512xf32>
    %197 = vector.broadcast %195 : vector<1x512xf32> to vector<2x512xf32>
    %198 = arith.mulf %196, %197 : vector<2x512xf32>
    %199 = arith.addf %193, %198 : vector<2x512xf32>
    %200 = vector.extract_strided_slice %2 {offsets = [0, 6], sizes = [2, 1], strides = [1, 1]} : vector<2x8xf32> to vector<2x1xf32>
    %201 = vector.extract_strided_slice %163 {offsets = [6, 0], sizes = [1, 512], strides = [1, 1]} : vector<8x512xf32> to vector<1x512xf32>
    %202 = vector.broadcast %200 : vector<2x1xf32> to vector<2x512xf32>
    %203 = vector.broadcast %201 : vector<1x512xf32> to vector<2x512xf32>
    %204 = arith.mulf %202, %203 : vector<2x512xf32>
    %205 = arith.addf %199, %204 : vector<2x512xf32>
    %206 = vector.extract_strided_slice %2 {offsets = [0, 7], sizes = [2, 1], strides = [1, 1]} : vector<2x8xf32> to vector<2x1xf32>
    %207 = vector.extract_strided_slice %163 {offsets = [7, 0], sizes = [1, 512], strides = [1, 1]} : vector<8x512xf32> to vector<1x512xf32>
    %208 = vector.broadcast %206 : vector<2x1xf32> to vector<2x512xf32>
    %209 = vector.broadcast %207 : vector<1x512xf32> to vector<2x512xf32>
    %210 = arith.mulf %208, %209 : vector<2x512xf32>
    %211 = arith.addf %205, %210 : vector<2x512xf32>
    %212 = arith.index_cast %c0_i32 : i32 to index
    %c0_16 = arith.constant 0 : index
    %c0_17 = arith.constant 0 : index
    %213 = vector.load %arg9[%212, %c0_16, %c0_17] : memref<1x2x512xf32, #tpu.memory_space<vmem>>, vector<1x2x512xf32>
    %214 = vector.shape_cast %213 : vector<1x2x512xf32> to vector<2x512xf32>
    %215 = vector.shape_cast %211 : vector<2x512xf32> to vector<1x2x512xf32>
    tpu.vector_store %arg9[%212, %c0_16, %c0_17], %215 {strides = array<i32>} : memref<1x2x512xf32, #tpu.memory_space<vmem>>, vector<1x2x512xf32>,
    %c1_i32_18 = arith.constant 1 : i32
    return
  }
  func.func @transform_0(%arg0: i32, %arg1: memref<1xi32, #tpu.memory_space<smem>>) -> (i32, i32, i32) {
    %c0_i32 = arith.constant 0 : i32
    %c0_i32_0 = arith.constant 0 : i32
    %c0_i32_1 = arith.constant 0 : i32
    return %arg0, %c0_i32, %c0_i32_0 : i32, i32, i32
  }
  func.func @transform_1(%arg0: i32, %arg1: memref<1xi32, #tpu.memory_space<smem>>) -> (i32, i32) {
    %c0_i32 = arith.constant 0 : i32
    %c0_i32_0 = arith.constant 0 : i32
    %c0_i32_1 = arith.constant 0 : i32
    return %c0_i32, %c0_i32_0 : i32, i32
  }
  func.func @transform_2(%arg0: i32, %arg1: memref<1xi32, #tpu.memory_space<smem>>) -> (i32, i32) {
    %c0_i32 = arith.constant 0 : i32
    %c0_i32_0 = arith.constant 0 : i32
    %c0_i32_1 = arith.constant 0 : i32
    return %c0_i32, %c0_i32_0 : i32, i32
  }
  func.func @transform_3(%arg0: i32, %arg1: memref<1xi32, #tpu.memory_space<smem>>) -> (i32, i32) {
    %c0_i32 = arith.constant 0 : i32
    %c0_i32_0 = arith.constant 0 : i32
    %c0_i32_1 = arith.constant 0 : i32
    return %c0_i32, %c0_i32_0 : i32, i32
  }
  func.func @transform_4(%arg0: i32, %arg1: memref<1xi32, #tpu.memory_space<smem>>) -> (i32, i32) {
    %c0_i32 = arith.constant 0 : i32
    %c0_i32_0 = arith.constant 0 : i32
    %c0_i32_1 = arith.constant 0 : i32
    return %c0_i32, %c0_i32_0 : i32, i32
  }
  func.func @transform_5(%arg0: i32, %arg1: memref<1xi32, #tpu.memory_space<smem>>) -> (i32, i32) {
    %c0_i32 = arith.constant 0 : i32
    %c0_i32_0 = arith.constant 0 : i32
    %c0_i32_1 = arith.constant 0 : i32
    return %c0_i32, %c0_i32_0 : i32, i32
  }
  func.func @transform_6(%arg0: i32, %arg1: memref<1xi32, #tpu.memory_space<smem>>) -> (i32, i32) {
    %c0_i32 = arith.constant 0 : i32
    %c0_i32_0 = arith.constant 0 : i32
    %c0_i32_1 = arith.constant 0 : i32
    return %c0_i32, %c0_i32_0 : i32, i32
  }
  func.func @transform_7(%arg0: i32, %arg1: memref<1xi32, #tpu.memory_space<smem>>) -> (i32, i32, i32) {
    %c0_i32 = arith.constant 0 : i32
    %c0_i32_0 = arith.constant 0 : i32
    %c0_i32_1 = arith.constant 0 : i32
    return %arg0, %c0_i32, %c0_i32_0 : i32, i32, i32
  }
}

</mosaic_0001>

<bundles_post_ra>
// kernel: mlp_with_dropout.1
= control target key start
LH: loop header
LB: loop body
LE: loop exit
PB: predicated region body
PF: predicated region fallthrough
CT: control target
= control target key end

     0   :  { %v731_v0 = vmov 0   ;;  %v732_v7 = vmov 1   ;;  %v733_v8 = vmov 2   ;;  %v734_v9 = vmov 3   ;;  %s1089_s5 = inlined_call_operand.vmem [shape: f32[8,1], index: 5, kind: input, shape index: {}]   ;;  %s1090_s3 = inlined_call_operand.vmem [shape: f32[16,1], index: 3, kind: input, shape index: {}]   ;;  %s1091_s2 = inlined_call_operand.vmem [shape: f32[16,4], index: 2, kind: input, shape index: {}]   ;;  %s1092_s7 = inlined_call_operand.vmem [shape: f32[2,1], index: 7, kind: input, shape index: {}]   ;;  %s1093_s4 = inlined_call_operand.vmem [shape: f32[8,16], index: 4, kind: input, shape index: {}]   ;;  %s1094_s6 = inlined_call_operand.vmem [shape: f32[2,8], index: 6, kind: input, shape index: {}]   ;;  %s1095_s1 = inlined_call_operand.vmem [shape: f32[1,4,512], index: 1, kind: input, shape index: {}]   ;;  %s1096_s0 = inlined_call_operand.<no memory space> [shape: s32[1], index: 0, kind: input, shape index: {}]   ;;  %s1097_s8 = inlined_call_operand.vmem [shape: f32[1,2,512], index: 8, kind: output, shape index: {}]  }
   0x1   :  { %699 = vset.pattern.permute.xlu2 %v731_v0  ;;  %698 = vset.pattern.permute.xlu1 %v731_v0  ;;  %v44_v1 = vld [vmem:[%s1089_s5] sm:$0xff]  ;;  %v33_v5 = vld [vmem:[%s1090_s3 + $0x8] sm:$0xff]  ;;  %v735_v11 = vmov 4   ;;  %v736_v12 = vmov 9   ;;  %v737_v13 = vmov 5   ;;  %v738_v14 = vmov 14  }
   0x2   :  { %v32_v2 = vld [vmem:[%s1090_s3] sm:$0xff]  ;;  %697 = vset.pattern.permute.xlu0 %v731_v0  ;;  %47 = vperm.xlu1 %698, %v44_v1   ;;  %v29_v6 = vld [vmem:[%s1091_s2 + $0x8] sm:$0xff]  ;;  %v739_v15 = vmov 6   ;;  %v740_v16 = vmov 7   ;;  %v741_v17 = vmov 8   ;;  %v742_v19 = vmov 10  }
   0x3   :  { %v28_v3 = vld [vmem:[%s1091_s2] sm:$0xff]  ;;  %36 = vperm.xlu0 %697, %v32_v2   ;;  %v743_v20 = vmov 11   ;;  %v744_v21 = vmov 12   ;;  %v745_v22 = vmov 13   ;;  %v746_v23 = vmov 15   ;;  %v69_v30 = vld [vmem:[%s1095_s1 + $0x8] sm:$0xff] }
   0x4   :  { %72 = vperm.xlu2 %699, %v28_v3   ;;  %v50_v4 = vld [vmem:[%s1092_s7] sm:$0x3]  ;;  %v84_v33 = vperm.slane %v69_v30, 0  ;;  %v85_v34 = vperm.slane %v69_v30, 4  ;;  %v156_v40 = vperm.slane %v69_v30, 2  ;;  %v157_v41 = vperm.slane %v69_v30, 6 }
   0x5   :  { %v30_v10 = vld [vmem:[%s1093_s4] sm:$0xff]  ;;  %v120_v48 = vperm.slane %v69_v30, 1  ;;  %v121_v49 = vperm.slane %v69_v30, 5  ;;  %v192_v52 = vperm.slane %v69_v30, 3  ;;  %v193_v53 = vperm.slane %v69_v30, 7 }
   0x6   :  { %v31_v18 = vld [vmem:[%s1094_s6] sm:$0x3]  ;;  %v92_v44 = vperm.slane %v84_v33, 0  ;;  %v93_v45 = vperm.slane %v85_v34, 0  ;;  %v847_v56 = vperm.slane %v156_v40, 2  ;;  %v849_v57 = vperm.slane %v157_v41, 2 }
   0x7   :  { %v68_v29 = vld [vmem:[%s1095_s1] sm:$0xff]  ;;  %v129_v1 = vperm.slane %v121_v49, 1  ;;  %s60_s20 = smul.u32 3266489917, %s1096_s0  ;;  %vm665_vm4 = vcmask 1041408   ;;  %vm667_vm5 = vcmask 1045508  }
   0x8   :  { %v82_v31 = vperm.slane %v68_v29, 0  ;;  %v83_v32 = vperm.slane %v68_v29, 4  ;;  %v154_v38 = vperm.slane %v68_v29, 2  ;;  %v155_v39 = vperm.slane %v68_v29, 6 }
   0x9   :  { %v118_v46 = vperm.slane %v68_v29, 1  ;;  %v119_v47 = vperm.slane %v68_v29, 5  ;;  %v190_v50 = vperm.slane %v68_v29, 3  ;;  %v191_v51 = vperm.slane %v68_v29, 7 }
   0xa   :  { %53 = vperm.xlu1 %698, %v50_v4   ;;  %v90_v42 = vperm.slane %v82_v31, 0  ;;  %v91_v43 = vperm.slane %v83_v32, 0  ;;  %v843_v54 = vperm.slane %v154_v38, 2  ;;  %v845_v55 = vperm.slane %v155_v39, 2 }
   0xb   :  { %41 = vperm.xlu0 %697, %v33_v5   ;;  %v126_v62 = vperm.slane %v118_v46, 1  ;;  %v127_v63 = vperm.slane %v119_v47, 1  ;;  %v851_v2 = vperm.slane %v190_v50, 3  ;;  %v855_v4 = vperm.slane %v192_v52, 3 }
   0xc   :  { %77 = vperm.xlu2 %699, %v29_v6   ;;  %v857_v5 = vperm.slane %v193_v53, 3  ;;  %vm669_vm6 = vcmask 1043456  }
  0x12   :  { %701 = vset.pattern.permute.xlu1 %v732_v7 }
  0x13   :  { %700 = vset.pattern.permute.xlu0 %v732_v7  ;;  %115 = vperm.xlu1 %701, %v29_v6  }
  0x14   :  { %702 = vset.pattern.permute.xlu2 %v733_v8  ;;  %111 = vperm.xlu0 %700, %v28_v3  }
  0x15   :  { %147 = vperm.xlu2 %702, %v28_v3  }
  0x1b   :  { %703 = vset.pattern.permute.xlu1 %v733_v8 }
  0x1c   :  { %705 = vset.pattern.permute.xlu0 %v734_v9  ;;  %151 = vperm.xlu1 %703, %v29_v6  }
  0x1d   :  { %704 = vset.pattern.permute.xlu2 %v734_v9  ;;  %187 = vperm.xlu0 %705, %v29_v6  }
  0x1e   :  { %183 = vperm.xlu2 %704, %v28_v3   ;;  %v853_v3 = vperm.slane %v191_v51, 3 }
  0x24   :  { %706 = vset.pattern.permute.xlu1 %v731_v0 }
  0x25   :  { %710 = vset.pattern.permute.xlu0 %v735_v11  ;;  %228 = vperm.xlu1 %706, %v30_v10  }
  0x26   :  { %707 = vset.pattern.permute.xlu2 %v732_v7  ;;  %292 = vperm.xlu0 %710, %v30_v10  }
  0x27   :  { %244 = vperm.xlu2 %707, %v30_v10  }
  0x2d   :  { %708 = vset.pattern.permute.xlu1 %v733_v8 }
  0x2e   :  { %715 = vset.pattern.permute.xlu0 %v736_v12  ;;  %260 = vperm.xlu1 %708, %v30_v10  }
  0x2f   :  { %709 = vset.pattern.permute.xlu2 %v734_v9  ;;  %372 = vperm.xlu0 %715, %v30_v10  }
  0x30   :  { %276 = vperm.xlu2 %709, %v30_v10  }
  0x36   :  { %711 = vset.pattern.permute.xlu1 %v737_v13 }
  0x37   :  { %720 = vset.pattern.permute.xlu0 %v738_v14  ;;  %308 = vperm.xlu1 %711, %v30_v10  }
  0x38   :  { %712 = vset.pattern.permute.xlu2 %v739_v15  ;;  %452 = vperm.xlu0 %720, %v30_v10  }
  0x39   :  { %324 = vperm.xlu2 %712, %v30_v10  }
  0x3f   :  { %713 = vset.pattern.permute.xlu1 %v740_v16 }
  0x40   :  { %725 = vset.pattern.permute.xlu0 %v734_v9  ;;  %340 = vperm.xlu1 %713, %v30_v10  }
  0x41   :  { %714 = vset.pattern.permute.xlu2 %v741_v17  ;;  %579 = vperm.xlu0 %725, %v31_v18  }
  0x42   :  { %356 = vperm.xlu2 %714, %v30_v10  }
  0x48   :  { %716 = vset.pattern.permute.xlu1 %v742_v19 }
  0x49   :  { %388 = vperm.xlu1 %716, %v30_v10   ;;  %730 = vset.pattern.permute.xlu0 %v740_v16 }
  0x4a   :  { %717 = vset.pattern.permute.xlu2 %v743_v20 }
  0x4b   :  { %404 = vperm.xlu2 %717, %v30_v10  }
  0x51   :  { %718 = vset.pattern.permute.xlu1 %v744_v21 }
  0x52   :  { %420 = vperm.xlu1 %718, %v30_v10  }
  0x53   :  { %719 = vset.pattern.permute.xlu2 %v745_v22 }
  0x54   :  { %436 = vperm.xlu2 %719, %v30_v10  }
  0x5a   :  { %721 = vset.pattern.permute.xlu1 %v746_v23 }
  0x5b   :  { %468 = vperm.xlu1 %721, %v30_v10  }
  0x5c   :  { %722 = vset.pattern.permute.xlu2 %v731_v0  ;;  %v128_v0 = vperm.slane %v120_v48, 1 }
  0x5d   :  { %531 = vperm.xlu2 %722, %v31_v18  }
  0x5e   :  { %v73_v24 = vpop.permute.xlu2 %72 }
  0x5f   :  { %v94_v58 = vmul.f32 %v90_v42, %v73_v24  ;;  %v95_v59 = vmul.f32 %v91_v43, %v73_v24  ;;  %v96_v60 = vmul.f32 %v92_v44, %v73_v24  ;;  %v97_v61 = vmul.f32 %v93_v45, %v73_v24 }
  0x63   :  { %723 = vset.pattern.permute.xlu1 %v732_v7 }
  0x64   :  { %547 = vperm.xlu1 %723, %v31_v18  }
  0x65   :  { %724 = vset.pattern.permute.xlu2 %v733_v8 }
  0x66   :  { %v829_v25 = vpop.permute.xlu2 %77  ;;  %563 = vperm.xlu2 %724, %v31_v18  }
  0x67   :  { %v98_v38 = vmul.f32 %v90_v42, %v829_v25  ;;  %v99_v39 = vmul.f32 %v91_v43, %v829_v25  ;;  %v100_v49 = vmul.f32 %v92_v44, %v829_v25 }
  0x6c   :  { %726 = vset.pattern.permute.xlu1 %v735_v11 }
  0x6d   :  { %595 = vperm.xlu1 %726, %v31_v18  }
  0x6e   :  { %727 = vset.pattern.permute.xlu2 %v737_v13 }
  0x6f   :  { %v148_v26 = vpop.permute.xlu2 %147  ;;  %611 = vperm.xlu2 %727, %v31_v18  }
  0x70   :  { %v166_v7 = vmul.f32 %v843_v54, %v148_v26  ;;  %v167_v8 = vmul.f32 %v845_v55, %v148_v26  ;;  %v168_v9 = vmul.f32 %v847_v56, %v148_v26  ;;  %v169_v10 = vmul.f32 %v849_v57, %v148_v26 }
  0x74   :  { %v831_v27 = vpop.permute.xlu1 %47 }
  0x75   :  { %v37_v28 = vpop.permute.xlu0 %36  ;;  %728 = vset.pattern.permute.xlu1 %v739_v15 }
  0x76   :  { %627 = vperm.xlu1 %728, %v31_v18   ;;  %v102_v13 = vadd.f32 %v94_v58, %v37_v28  ;;  %v103_v14 = vadd.f32 %v95_v59, %v37_v28  ;;  %v104_v15 = vadd.f32 %v96_v60, %v37_v28 }
  0x77   :  { %729 = vset.pattern.permute.xlu2 %v740_v16  ;;  %v105_v16 = vadd.f32 %v97_v61, %v37_v28 }
  0x78   :  { %v184_v35 = vpop.permute.xlu2 %183  ;;  %643 = vperm.xlu2 %729, %v31_v18  }
  0x79   :  { %v202_v21 = vmul.f32 %v851_v2, %v184_v35  ;;  %v203_v22 = vmul.f32 %v853_v3, %v184_v35  ;;  %v204_v23 = vmul.f32 %v855_v4, %v184_v35  ;;  %v205_v24 = vmul.f32 %v857_v5, %v184_v35 }
  0x7a   :  { %v101_v35 = vmul.f32 %v93_v45, %v829_v25 }
  0x7c   :  { %v839_v36 = vpop.permute.xlu1 %53 }
  0x7d   :  { %v841_v37 = vpop.permute.xlu0 %41 }
  0x7e   :  { %v106_v50 = vadd.f32 %v98_v38, %v841_v37  ;;  %v107_v51 = vadd.f32 %v99_v39, %v841_v37  ;;  %v108_v44 = vadd.f32 %v100_v49, %v841_v37  ;;  %v109_v25 = vadd.f32 %v101_v35, %v841_v37 }
  0x81   :  { %v859_v6 = vpop.permute.xlu2 %244 }
  0x85   :  { %v116_v11 = vpop.permute.xlu1 %115 }
  0x86   :  { %v112_v12 = vpop.permute.xlu0 %111  ;;  %v134_v53 = vmul.f32 %v126_v62, %v116_v11  ;;  %v135_v58 = vmul.f32 %v127_v63, %v116_v11  ;;  %v136_v59 = vmul.f32 %v128_v0, %v116_v11  ;;  %v137_v42 = vmul.f32 %v129_v1, %v116_v11 }
  0x87   :  { %v130_v17 = vmul.f32 %v126_v62, %v112_v12  ;;  %v131_v18 = vmul.f32 %v127_v63, %v112_v12  ;;  %v132_v19 = vmul.f32 %v128_v0, %v112_v12  ;;  %v133_v20 = vmul.f32 %v129_v1, %v112_v12 }
  0x88   :  { %v142_v1 = vadd.f32 %v134_v53, %v106_v50  ;;  %v145_v11 = vadd.f32 %v137_v42, %v109_v25 }
  0x89   :  { %v138_v29 = vadd.f32 %v130_v17, %v102_v13  ;;  %v139_v26 = vadd.f32 %v131_v18, %v103_v14  ;;  %v140_v30 = vadd.f32 %v132_v19, %v104_v15  ;;  %v141_v31 = vadd.f32 %v133_v20, %v105_v16 }
  0x8a   :  { %v277_v52 = vpop.permute.xlu2 %276 }
  0x8b   :  { %v174_v32 = vadd.f32 %v166_v7, %v138_v29  ;;  %v175_v33 = vadd.f32 %v167_v8, %v139_v26  ;;  %v176_v34 = vadd.f32 %v168_v9, %v140_v30  ;;  %v177_v28 = vadd.f32 %v169_v10, %v141_v31 }
  0x8c   :  { %v143_v9 = vadd.f32 %v135_v58, %v107_v51  ;;  %v144_v10 = vadd.f32 %v136_v59, %v108_v44 }
  0x8d   :  { %v210_v40 = vadd.f32 %v202_v21, %v174_v32  ;;  %v211_v41 = vadd.f32 %v203_v22, %v175_v33  ;;  %v212_v46 = vadd.f32 %v204_v23, %v176_v34  ;;  %v213_v47 = vadd.f32 %v205_v24, %v177_v28 }
  0x8e   :  { %v152_v48 = vpop.permute.xlu1 %151 }
  0x8f   :  { %v875_v60 = vmax.f32 %v210_v40, 0.0  ;;  %v877_v43 = vmax.f32 %v211_v41, 0.0  ;;  %v879_v61 = vmax.f32 %v212_v46, 0.0  ;;  %v881_v7 = vmax.f32 %v213_v47, 0.0  ;;  %v188_v0 = vpop.permute.xlu0 %187 }
  0x90   :  { %v170_v45 = vmul.f32 %v843_v54, %v152_v48  ;;  %v171_v8 = vmul.f32 %v845_v55, %v152_v48  ;;  %v172_v62 = vmul.f32 %v847_v56, %v152_v48  ;;  %v173_v63 = vmul.f32 %v849_v57, %v152_v48 }
  0x91   :  { %v279_v12 = vperm.slane %v875_v60, 3  ;;  %v280_v13 = vperm.slane %v877_v43, 3  ;;  %v281_v14 = vperm.slane %v879_v61, 3  ;;  %v282_v37 = vperm.slane %v881_v7, 3 }
  0x92   :  { %v178_v54 = vadd.f32 %v170_v45, %v142_v1  ;;  %v179_v15 = vadd.f32 %v171_v8, %v143_v9  ;;  %v206_v55 = vmul.f32 %v851_v2, %v188_v0  ;;  %v207_v56 = vmul.f32 %v853_v3, %v188_v0 }
  0x93   :  { %v180_v57 = vadd.f32 %v172_v62, %v144_v10  ;;  %v181_v16 = vadd.f32 %v173_v63, %v145_v11  ;;  %v208_v17 = vmul.f32 %v855_v4, %v188_v0  ;;  %v209_v18 = vmul.f32 %v857_v5, %v188_v0  ;;  %v325_v3 = vpop.permute.xlu2 %324 }
  0x94   :  { %v327_v19 = vperm.slane %v875_v60, 6  ;;  %v328_v20 = vperm.slane %v877_v43, 6  ;;  %v899_v22 = vmul.f32 %v279_v12, %v277_v52  ;;  %v901_v23 = vmul.f32 %v280_v13, %v277_v52 }
  0x95   :  { %v903_v24 = vmul.f32 %v281_v14, %v277_v52  ;;  %v905_v2 = vmul.f32 %v282_v37, %v277_v52  ;;  %v214_v29 = vadd.f32 %v206_v55, %v178_v54  ;;  %v215_v26 = vadd.f32 %v207_v56, %v179_v15 }
  0x96   :  { %v329_v4 = vperm.slane %v879_v61, 6  ;;  %v330_v5 = vperm.slane %v881_v7, 6  ;;  %v231_v30 = vperm.slane %v875_v60, 0  ;;  %v232_v31 = vperm.slane %v877_v43, 0 }
  0x97   :  { %v229_v21 = vpop.permute.xlu1 %228  ;;  %v233_v32 = vperm.slane %v879_v61, 0  ;;  %v234_v33 = vperm.slane %v881_v7, 0  ;;  %v216_v34 = vadd.f32 %v208_v17, %v180_v57  ;;  %v217_v28 = vadd.f32 %v209_v18, %v181_v16 }
  0x98   :  { %v913_v38 = vmul.f32 %v327_v19, %v325_v3  ;;  %v915_v39 = vmul.f32 %v328_v20, %v325_v3  ;;  %v235_v40 = vmul.f32 %v231_v30, %v229_v21  ;;  %v236_v41 = vmul.f32 %v232_v31, %v229_v21  ;;  %v293_v44 = vpop.permute.xlu0 %292 }
  0x99   :  { %v237_v46 = vmul.f32 %v233_v32, %v229_v21  ;;  %v238_v47 = vmul.f32 %v234_v33, %v229_v21  ;;  %v917_v48 = vmax.f32 %v214_v29, 0.0  ;;  %v919_v49 = vmax.f32 %v215_v26, 0.0 }
  0x9a   :  { %v921_v35 = vmul.f32 %v329_v4, %v325_v3  ;;  %v923_v50 = vmul.f32 %v330_v5, %v325_v3  ;;  %v247_v51 = vperm.slane %v875_v60, 1  ;;  %v248_v52 = vperm.slane %v877_v43, 1 }
  0x9b   :  { %v249_v53 = vperm.slane %v879_v61, 1  ;;  %v250_v58 = vperm.slane %v881_v7, 1  ;;  %v929_v59 = vmax.f32 %v216_v34, 0.0  ;;  %v931_v42 = vmax.f32 %v217_v28, 0.0 }
  0x9c   :  { %v295_v25 = vperm.slane %v875_v60, 4  ;;  %v296_v45 = vperm.slane %v877_v43, 4  ;;  %v239_v8 = vadd.f32 %v235_v40, %v831_v27  ;;  %v240_v62 = vadd.f32 %v236_v41, %v831_v27  ;;  %v357_v57 = vpop.permute.xlu2 %356 }
  0x9d   :  { %v241_v63 = vadd.f32 %v237_v46, %v831_v27  ;;  %v242_v0 = vadd.f32 %v238_v47, %v831_v27  ;;  %v263_v9 = vperm.slane %v875_v60, 2  ;;  %v264_v10 = vperm.slane %v877_v43, 2 }
  0x9e   :  { %v265_v11 = vperm.slane %v879_v61, 2  ;;  %v266_v12 = vperm.slane %v881_v7, 2  ;;  %v251_v13 = vmul.f32 %v247_v51, %v859_v6  ;;  %v252_v14 = vmul.f32 %v248_v52, %v859_v6 }
  0x9f   :  { %v253_v37 = vmul.f32 %v249_v53, %v859_v6  ;;  %v254_v54 = vmul.f32 %v250_v58, %v859_v6  ;;  %v297_v20 = vperm.slane %v879_v61, 4  ;;  %v298_v21 = vperm.slane %v881_v7, 4 }
  0xa0   :  { %v261_v1 = vpop.permute.xlu1 %260  ;;  %v255_v16 = vadd.f32 %v251_v13, %v239_v8  ;;  %v256_v17 = vadd.f32 %v252_v14, %v240_v62  ;;  %v359_v3 = vperm.slane %v917_v48, 0  ;;  %v360_v29 = vperm.slane %v919_v49, 0 }
  0xa1   :  { %v267_v15 = vmul.f32 %v263_v9, %v261_v1  ;;  %v268_v55 = vmul.f32 %v264_v10, %v261_v1  ;;  %v269_v27 = vmul.f32 %v265_v11, %v261_v1  ;;  %v270_v56 = vmul.f32 %v266_v12, %v261_v1  ;;  %v373_v51 = vpop.permute.xlu0 %372 }
  0xa2   :  { %v257_v18 = vadd.f32 %v253_v37, %v241_v63  ;;  %v258_v19 = vadd.f32 %v254_v54, %v242_v0  ;;  %v299_v30 = vmul.f32 %v295_v25, %v293_v44  ;;  %v300_v31 = vmul.f32 %v296_v45, %v293_v44 }
  0xa3   :  { %v271_v26 = vadd.f32 %v267_v15, %v255_v16  ;;  %v272_v4 = vadd.f32 %v268_v55, %v256_v17  ;;  %v361_v32 = vperm.slane %v929_v59, 0  ;;  %v362_v33 = vperm.slane %v931_v42, 0 }
  0xa4   :  { %v273_v6 = vadd.f32 %v269_v27, %v257_v18  ;;  %v274_v5 = vadd.f32 %v270_v56, %v258_v19  ;;  %v301_v34 = vmul.f32 %v297_v20, %v293_v44  ;;  %v302_v28 = vmul.f32 %v298_v21, %v293_v44 }
  0xa5   :  { %v953_v40 = vmul.f32 %v359_v3, %v357_v57  ;;  %v955_v41 = vmul.f32 %v360_v29, %v357_v57  ;;  %v957_v46 = vmul.f32 %v361_v32, %v357_v57  ;;  %v959_v47 = vmul.f32 %v362_v33, %v357_v57  ;;  %v405_v13 = vpop.permute.xlu2 %404 }
  0xa6   :  { %v375_v52 = vperm.slane %v917_v48, 1  ;;  %v376_v53 = vperm.slane %v919_v49, 1  ;;  %v287_v58 = vadd.f32 %v899_v22, %v271_v26  ;;  %v288_v25 = vadd.f32 %v901_v23, %v272_v4 }
  0xa7   :  { %v289_v45 = vadd.f32 %v903_v24, %v273_v6  ;;  %v290_v44 = vadd.f32 %v905_v2, %v274_v5  ;;  %v311_v62 = vperm.slane %v875_v60, 5  ;;  %v312_v63 = vperm.slane %v877_v43, 5 }
  0xa8   :  { %v313_v0 = vperm.slane %v879_v61, 5  ;;  %v314_v1 = vperm.slane %v881_v7, 5  ;;  %v377_v9 = vperm.slane %v929_v59, 1  ;;  %v378_v10 = vperm.slane %v931_v42, 1 }
  0xa9   :  { %v309_v8 = vpop.permute.xlu1 %308  ;;  %v973_v22 = vmul.f32 %v375_v52, %v373_v51  ;;  %v975_v23 = vmul.f32 %v376_v53, %v373_v51  ;;  %v303_v14 = vadd.f32 %v299_v30, %v287_v58  ;;  %v304_v37 = vadd.f32 %v300_v31, %v288_v25 }
  0xaa   :  { %v315_v24 = vmul.f32 %v311_v62, %v309_v8  ;;  %v316_v11 = vmul.f32 %v312_v63, %v309_v8  ;;  %v317_v2 = vmul.f32 %v313_v0, %v309_v8  ;;  %v318_v12 = vmul.f32 %v314_v1, %v309_v8 }
  0xab   :  { %v305_v54 = vadd.f32 %v301_v34, %v289_v45  ;;  %v306_v15 = vadd.f32 %v302_v28, %v290_v44  ;;  %v407_v55 = vperm.slane %v917_v48, 3  ;;  %v408_v27 = vperm.slane %v919_v49, 3 }
  0xac   :  { %v409_v56 = vperm.slane %v929_v59, 3  ;;  %v410_v57 = vperm.slane %v931_v42, 3  ;;  %v319_v16 = vadd.f32 %v315_v24, %v303_v14  ;;  %v320_v17 = vadd.f32 %v316_v11, %v304_v37 }
  0xad   :  { %v321_v18 = vadd.f32 %v317_v2, %v305_v54  ;;  %v322_v19 = vadd.f32 %v318_v12, %v306_v15  ;;  %v381_v20 = vmul.f32 %v377_v9, %v373_v51  ;;  %v382_v21 = vmul.f32 %v378_v10, %v373_v51 }
  0xae   :  { %v981_v3 = vmul.f32 %v407_v55, %v405_v13  ;;  %v983_v29 = vmul.f32 %v408_v27, %v405_v13  ;;  %v985_v26 = vmul.f32 %v409_v56, %v405_v13  ;;  %v987_v4 = vmul.f32 %v410_v57, %v405_v13 }
  0xaf   :  { %v455_v6 = vperm.slane %v917_v48, 6  ;;  %v456_v5 = vperm.slane %v919_v49, 6  ;;  %v343_v31 = vperm.slane %v875_v60, 7  ;;  %v344_v32 = vperm.slane %v877_v43, 7 }
  0xb0   :  { %v345_v33 = vperm.slane %v879_v61, 7  ;;  %v346_v34 = vperm.slane %v881_v7, 7  ;;  %v335_v28 = vadd.f32 %v913_v38, %v319_v16  ;;  %v336_v51 = vadd.f32 %v915_v39, %v320_v17 }
  0xb1   :  { %v337_v52 = vadd.f32 %v921_v35, %v321_v18  ;;  %v338_v53 = vadd.f32 %v923_v50, %v322_v19  ;;  %v457_v60 = vperm.slane %v929_v59, 6  ;;  %v458_v43 = vperm.slane %v931_v42, 6  ;;  %v437_v19 = vpop.permute.xlu2 %436 }
  0xb2   :  { %v341_v30 = vpop.permute.xlu1 %340  ;;  %v439_v61 = vperm.slane %v917_v48, 5  ;;  %v440_v7 = vperm.slane %v919_v49, 5  ;;  %v441_v8 = vperm.slane %v929_v59, 5  ;;  %v442_v62 = vperm.slane %v931_v42, 5 }
  0xb3   :  { %v347_v58 = vmul.f32 %v343_v31, %v341_v30  ;;  %v348_v25 = vmul.f32 %v344_v32, %v341_v30  ;;  %v349_v45 = vmul.f32 %v345_v33, %v341_v30  ;;  %v350_v44 = vmul.f32 %v346_v34, %v341_v30 }
  0xb4   :  { %v391_v63 = vperm.slane %v917_v48, 2  ;;  %v57_v0 = vlaneseq  ;;  %v392_v10 = vperm.slane %v919_v49, 2  ;;  %v393_v24 = vperm.slane %v929_v59, 2 }
  0xb5   :  { %v351_v38 = vadd.f32 %v347_v58, %v335_v28  ;;  %v352_v39 = vadd.f32 %v348_v25, %v336_v51  ;;  %v353_v35 = vadd.f32 %v349_v45, %v337_v52  ;;  %v354_v50 = vadd.f32 %v350_v44, %v338_v53 }
  0xb6   :  { %v394_v11 = vperm.slane %v931_v42, 2  ;;  %v58_v2 = vshrl.u32 %v57_v0, 7  ;;  %v64_v12 = vand.u32 127, %v57_v0  ;;  %v61_v13 = vstv %s60_s20 }
  0xb7   :  { %v367_v1 = vadd.f32 %v953_v40, %v351_v38  ;;  %v368_v9 = vadd.f32 %v955_v41, %v352_v39  ;;  %v369_v14 = vadd.f32 %v957_v46, %v353_v35  ;;  %v370_v37 = vadd.f32 %v959_v47, %v354_v50 }
  0xb8   :  { %v59_v55 = vmul.u32 2246822519, %v58_v2  ;;  %v65_v41 = vadd.s32 128, %v64_v12  ;;  %v66_v27 = vadd.s32 256, %v64_v12  ;;  %v67_v56 = vadd.s32 384, %v64_v12 }
  0xb9   :  { %v383_v54 = vadd.f32 %v973_v22, %v367_v1  ;;  %v384_v15 = vadd.f32 %v975_v23, %v368_v9  ;;  %v493_v30 = vmul.u32 2654435761, %v64_v12  ;;  %v385_v33 = vadd.f32 %v381_v20, %v369_v14 }
  0xba   :  { %v494_v31 = vmul.u32 2654435761, %v65_v41  ;;  %v495_v32 = vmul.u32 2654435761, %v66_v27  ;;  %v62_v46 = vxor.u32 %v61_v13, %v59_v55  ;;  %v386_v47 = vadd.f32 %v382_v21, %v370_v37 }
  0xbb   :  { %v389_v40 = vpop.permute.xlu1 %388  ;;  %v496_v28 = vmul.u32 2654435761, %v67_v56  ;;  %v443_v53 = vmul.f32 %v439_v61, %v437_v19  ;;  %v444_v58 = vmul.f32 %v440_v7, %v437_v19  ;;  %v423_v50 = vperm.slane %v917_v48, 4 }
  0xbc   :  { %v395_v57 = vmul.f32 %v391_v63, %v389_v40  ;;  %v396_v16 = vmul.f32 %v392_v10, %v389_v40  ;;  %v397_v17 = vmul.f32 %v393_v24, %v389_v40  ;;  %v398_v18 = vmul.f32 %v394_v11, %v389_v40  ;;  %v453_v40 = vpop.permute.xlu0 %452 }
  0xbd   :  { %v497_v23 = vxor.u32 %v493_v30, %v62_v46  ;;  %v498_v51 = vxor.u32 %v494_v31, %v62_v46  ;;  %v499_v52 = vxor.u32 %v495_v32, %v62_v46  ;;  %v500_v44 = vxor.u32 %v496_v28, %v62_v46  ;;  %v532_v32 = vpop.permute.xlu2 %531 }
  0xbe   :  { %v399_v34 = vadd.f32 %v395_v57, %v383_v54  ;;  %v400_v22 = vadd.f32 %v396_v16, %v384_v15  ;;  %v401_v25 = vadd.f32 %v397_v17, %v385_v33  ;;  %v402_v45 = vadd.f32 %v398_v18, %v386_v47 }
  0xbf   :  { %v501_v38 = vshrl.u32 %v497_v23, 16  ;;  %v502_v39 = vshrl.u32 %v498_v51, 16  ;;  %v503_v35 = vshrl.u32 %v499_v52, 16  ;;  %v424_v63 = vperm.slane %v919_v49, 4 }
  0xc0   :  { %v425_v20 = vperm.slane %v929_v59, 4  ;;  %v426_v21 = vperm.slane %v931_v42, 4  ;;  %v415_v0 = vadd.f32 %v981_v3, %v399_v34  ;;  %v416_v1 = vadd.f32 %v983_v29, %v400_v22 }
  0xc1   :  { %v504_v61 = vshrl.u32 %v500_v44, 16  ;;  %v505_v7 = vxor.u32 %v501_v38, %v497_v23  ;;  %v417_v10 = vadd.f32 %v985_v26, %v401_v25  ;;  %v418_v24 = vadd.f32 %v987_v4, %v402_v45 }
  0xc2   :  { %v506_v11 = vxor.u32 %v502_v39, %v498_v51  ;;  %v507_v2 = vxor.u32 %v503_v35, %v499_v52  ;;  %v445_v54 = vmul.f32 %v441_v8, %v437_v19  ;;  %v446_v3 = vmul.f32 %v442_v62, %v437_v19 }
  0xc3   :  { %v508_v29 = vxor.u32 %v504_v61, %v500_v44  ;;  %v509_v15 = vmul.u32 2146121005, %v505_v7  ;;  %v459_v8 = vmul.f32 %v455_v6, %v453_v40  ;;  %v460_v62 = vmul.f32 %v456_v5, %v453_v40 }
  0xc4   :  { %v421_v9 = vpop.permute.xlu1 %420  ;;  %v510_v4 = vmul.u32 2146121005, %v506_v11  ;;  %v511_v56 = vmul.u32 2146121005, %v507_v2  ;;  %v461_v19 = vmul.f32 %v457_v60, %v453_v40  ;;  %v462_v31 = vmul.f32 %v458_v43, %v453_v40 }
  0xc5   :  { %v427_v12 = vmul.f32 %v423_v50, %v421_v9  ;;  %v428_v13 = vmul.f32 %v424_v63, %v421_v9  ;;  %v429_v14 = vmul.f32 %v425_v20, %v421_v9  ;;  %v430_v37 = vmul.f32 %v426_v21, %v421_v9 }
  0xc6   :  { %v512_v57 = vmul.u32 2146121005, %v508_v29  ;;  %v471_v46 = vperm.slane %v917_v48, 7  ;;  %v472_v33 = vperm.slane %v919_v49, 7  ;;  %v473_v47 = vperm.slane %v929_v59, 7 }
  0xc7   :  { %v431_v55 = vadd.f32 %v427_v12, %v415_v0  ;;  %v432_v41 = vadd.f32 %v428_v13, %v416_v1  ;;  %v433_v26 = vadd.f32 %v429_v14, %v417_v10  ;;  %v434_v27 = vadd.f32 %v430_v37, %v418_v24  ;;  %v564_v0 = vpop.permute.xlu2 %563 }
  0xc8   :  { %v474_v34 = vperm.slane %v931_v42, 7  ;;  %v677_v22 = vxor.u32 2147483648, %v509_v15  ;;  %v678_v6 = vxor.u32 2147483648, %v510_v4  ;;  %v679_v28 = vxor.u32 2147483648, %v511_v56 }
  0xc9   :  { %v447_v16 = vadd.f32 %v443_v53, %v431_v55  ;;  %v448_v17 = vadd.f32 %v444_v58, %v432_v41  ;;  %v449_v18 = vadd.f32 %v445_v54, %v433_v26  ;;  %v450_v30 = vadd.f32 %v446_v3, %v434_v27 }
  0xca   :  { %v680_v23 = vxor.u32 2147483648, %v512_v57  ;;  %vm515_vm0 = vcmp.lt.s32.totalorder %v677_v22, 0  ;;  %vm518_vm1 = vcmp.lt.s32.totalorder %v678_v6, 0  ;;  %vm521_vm2 = vcmp.lt.s32.totalorder %v679_v28, 0 }
  0xcb   :  { %v463_v51 = vadd.f32 %v459_v8, %v447_v16  ;;  %v464_v52 = vadd.f32 %v460_v62, %v448_v17  ;;  %v465_v60 = vadd.f32 %v461_v19, %v449_v18  ;;  %v466_v53 = vadd.f32 %v462_v31, %v450_v30 }
  0xcc   :  { %vm524_vm3 = vcmp.lt.s32.totalorder %v680_v23, 0 }
  0xcd   :  { %v469_v5 = vpop.permute.xlu1 %468 }
  0xce   :  { %v475_v58 = vmul.f32 %v471_v46, %v469_v5  ;;  %v476_v43 = vmul.f32 %v472_v33, %v469_v5  ;;  %v477_v25 = vmul.f32 %v473_v47, %v469_v5  ;;  %v478_v45 = vmul.f32 %v474_v34, %v469_v5  ;;  %v580_v46 = vpop.permute.xlu0 %579 }
  0xcf   :  { %v612_v22 = vpop.permute.xlu2 %611 }
  0xd0   :  { %v479_v48 = vadd.f32 %v475_v58, %v463_v51  ;;  %v480_v44 = vadd.f32 %v476_v43, %v464_v52  ;;  %v481_v49 = vadd.f32 %v477_v25, %v465_v60  ;;  %v482_v38 = vadd.f32 %v478_v45, %v466_v53 }
  0xd2   :  { %v483_v59 = vmax.f32 %v479_v48, 0.0  ;;  %v484_v42 = vmax.f32 %v480_v44, 0.0  ;;  %v485_v39 = vmax.f32 %v481_v49, 0.0  ;;  %v486_v35 = vmax.f32 %v482_v38, 0.0 }
  0xd4   :  { %v1042_v50 = vsel %vm515_vm0, %v483_v59, 0.0  ;;  %v1044_v63 = vsel %vm518_vm1, %v484_v42, 0.0  ;;  %v1046_v20 = vsel %vm521_vm2, %v485_v39, 0.0  ;;  %v1048_v21 = vsel %vm524_vm3, %v486_v35, 0.0 }
  0xd5   :  { %v534_v61 = vperm.slane %v1042_v50, 0  ;;  %v535_v7 = vperm.slane %v1044_v63, 0  ;;  %v536_v9 = vperm.slane %v1046_v20, 0  ;;  %v537_v10 = vperm.slane %v1048_v21, 0 }
  0xd6   :  { %v548_v1 = vpop.permute.xlu1 %547  ;;  %v614_v24 = vperm.slane %v1042_v50, 5  ;;  %v615_v11 = vperm.slane %v1044_v63, 5  ;;  %v616_v2 = vperm.slane %v1046_v20, 5  ;;  %v617_v12 = vperm.slane %v1048_v21, 5 }
  0xd7   :  { %v538_v13 = vmul.f32 %v534_v61, %v532_v32  ;;  %v539_v14 = vmul.f32 %v535_v7, %v532_v32  ;;  %v540_v37 = vmul.f32 %v536_v9, %v532_v32  ;;  %v541_v54 = vmul.f32 %v537_v10, %v532_v32 }
  0xd8   :  { %v550_v3 = vperm.slane %v1042_v50, 1  ;;  %v551_v29 = vperm.slane %v1044_v63, 1  ;;  %v552_v15 = vperm.slane %v1046_v20, 1  ;;  %v553_v40 = vperm.slane %v1048_v21, 1 }
  0xd9   :  { %v542_v55 = vadd.f32 %v538_v13, %v839_v36  ;;  %v543_v41 = vadd.f32 %v539_v14, %v839_v36  ;;  %v544_v26 = vadd.f32 %v540_v37, %v839_v36  ;;  %v545_v27 = vadd.f32 %v541_v54, %v839_v36 }
  0xda   :  { %v554_v4 = vmul.f32 %v550_v3, %v548_v1  ;;  %v555_v56 = vmul.f32 %v551_v29, %v548_v1  ;;  %v556_v57 = vmul.f32 %v552_v15, %v548_v1  ;;  %v557_v16 = vmul.f32 %v553_v40, %v548_v1 }
  0xdb   :  { %v566_v17 = vperm.slane %v1042_v50, 2  ;;  %v567_v18 = vperm.slane %v1044_v63, 2  ;;  %v568_v30 = vperm.slane %v1046_v20, 2  ;;  %v569_v8 = vperm.slane %v1048_v21, 2 }
  0xdc   :  { %v558_v62 = vadd.f32 %v554_v4, %v542_v55  ;;  %v559_v19 = vadd.f32 %v555_v56, %v543_v41  ;;  %v560_v31 = vadd.f32 %v556_v57, %v544_v26  ;;  %v561_v32 = vadd.f32 %v557_v16, %v545_v27  ;;  %v644_v55 = vpop.permute.xlu2 %643 }
  0xdd   :  { %v570_v33 = vmul.f32 %v566_v17, %v564_v0  ;;  %v571_v47 = vmul.f32 %v567_v18, %v564_v0  ;;  %v572_v36 = vmul.f32 %v568_v30, %v564_v0  ;;  %v573_v34 = vmul.f32 %v569_v8, %v564_v0 }
  0xde   :  { %v582_v6 = vperm.slane %v1042_v50, 3  ;;  %v583_v28 = vperm.slane %v1044_v63, 3  ;;  %v584_v23 = vperm.slane %v1046_v20, 3  ;;  %v585_v5 = vperm.slane %v1048_v21, 3 }
  0xdf   :  { %v596_v51 = vpop.permute.xlu1 %595  ;;  %v574_v52 = vadd.f32 %v570_v33, %v558_v62  ;;  %v575_v60 = vadd.f32 %v571_v47, %v559_v19  ;;  %v576_v53 = vadd.f32 %v572_v36, %v560_v31  ;;  %v577_v58 = vadd.f32 %v573_v34, %v561_v32 }
  0xe0   :  { %v586_v43 = vmul.f32 %v582_v6, %v580_v46  ;;  %v587_v25 = vmul.f32 %v583_v28, %v580_v46  ;;  %v588_v45 = vmul.f32 %v584_v23, %v580_v46  ;;  %v589_v48 = vmul.f32 %v585_v5, %v580_v46 }
  0xe1   :  { %v618_v44 = vmul.f32 %v614_v24, %v612_v22  ;;  %v619_v49 = vmul.f32 %v615_v11, %v612_v22  ;;  %v620_v38 = vmul.f32 %v616_v2, %v612_v22  ;;  %v621_v59 = vmul.f32 %v617_v12, %v612_v22 }
  0xe2   :  { %v590_v42 = vadd.f32 %v586_v43, %v574_v52  ;;  %v591_v39 = vadd.f32 %v587_v25, %v575_v60  ;;  %v592_v35 = vadd.f32 %v588_v45, %v576_v53  ;;  %v593_v0 = vadd.f32 %v589_v48, %v577_v58 }
  0xe3   :  { %v598_v1 = vperm.slane %v1042_v50, 4  ;;  %v599_v61 = vperm.slane %v1044_v63, 4  ;;  %v600_v7 = vperm.slane %v1046_v20, 4  ;;  %v601_v9 = vperm.slane %v1048_v21, 4 }
  0xe4   :  { %v646_v10 = vperm.slane %v1042_v50, 7  ;;  %v647_v13 = vperm.slane %v1044_v63, 7  ;;  %v648_v24 = vperm.slane %v1046_v20, 7  ;;  %v649_v11 = vperm.slane %v1048_v21, 7 }
  0xe5   :  { %v602_v2 = vmul.f32 %v598_v1, %v596_v51  ;;  %v603_v12 = vmul.f32 %v599_v61, %v596_v51  ;;  %v604_v14 = vmul.f32 %v600_v7, %v596_v51  ;;  %v605_v37 = vmul.f32 %v601_v9, %v596_v51 }
  0xe6   :  { %v630_v3 = vperm.slane %v1042_v50, 6  ;;  %v631_v29 = vperm.slane %v1044_v63, 6  ;;  %v632_v15 = vperm.slane %v1046_v20, 6  ;;  %v633_v40 = vperm.slane %v1048_v21, 6 }
  0xe7   :  { %v606_v41 = vadd.f32 %v602_v2, %v590_v42  ;;  %v607_v26 = vadd.f32 %v603_v12, %v591_v39  ;;  %v608_v27 = vadd.f32 %v604_v14, %v592_v35  ;;  %v609_v4 = vadd.f32 %v605_v37, %v593_v0 }
  0xe8   :  { %v628_v54 = vpop.permute.xlu1 %627  ;;  %v651_v50 = vmul.f32 %v647_v13, %v644_v55  ;;  %v652_v19 = vmul.f32 %v648_v24, %v644_v55  ;;  %v653_v63 = vmul.f32 %v649_v11, %v644_v55  ;;  %v650_v46 = vmul.f32 %v646_v10, %v644_v55 }
  0xe9   :  { %v634_v56 = vmul.f32 %v630_v3, %v628_v54  ;;  %v635_v57 = vmul.f32 %v631_v29, %v628_v54  ;;  %v636_v16 = vmul.f32 %v632_v15, %v628_v54  ;;  %v637_v17 = vmul.f32 %v633_v40, %v628_v54 }
  0xea   :  { %v622_v18 = vadd.f32 %v618_v44, %v606_v41  ;;  %v623_v30 = vadd.f32 %v619_v49, %v607_v26  ;;  %v624_v8 = vadd.f32 %v620_v38, %v608_v27  ;;  %v625_v62 = vadd.f32 %v621_v59, %v609_v4 }
  0xec   :  { %v638_v31 = vadd.f32 %v634_v56, %v622_v18  ;;  %v639_v20 = vadd.f32 %v635_v57, %v623_v30  ;;  %v640_v32 = vadd.f32 %v636_v16, %v624_v8  ;;  %v641_v21 = vadd.f32 %v637_v17, %v625_v62 }
  0xee   :  { %v655_v33 = vadd.f32 %v651_v50, %v639_v20  ;;  %v656_v47 = vadd.f32 %v652_v19, %v640_v32  ;;  %v657_v36 = vadd.f32 %v653_v63, %v641_v21  ;;  %v654_v34 = vadd.f32 %v650_v46, %v638_v31 }
  0xf0   :  { %v662_v22 = vrot.slane %v655_v33, 6  ;;  %v663_v6 = vrot.slane %v656_v47, 4  ;;  %v664_v28 = vrot.slane %v657_v36, 2 }
  0xf2   :  { %v666_v23 = vsel %vm665_vm4, %v654_v34, %v662_v22  ;;  %v668_v5 = vsel %vm667_vm5, %v663_v6, %v664_v28 }
  0xf3   :  { %v670_v51 = vsel %vm669_vm6, %v666_v23, %v668_v5 }
  0xf4   :  { %672 = vst [vmem:[%s1097_s8] sm:$0xff] %v670_v51 }

</bundles_post_ra>
